<compile_context>
chip_gen: v5e
topology: v5e:2x2
jax: 0.10.0
libtpu: 0.0.40
codegen_flags: <defaults>
</compile_context>

<pallas_src>
import functools

import jax
import jax.numpy as jnp
from jax.experimental import pallas as pl
from jax.experimental.pallas import tpu as pltpu


def _round_up(x: int, m: int) -> int:
    return ((x + m - 1) // m) * m


def feature_transformer_kernel(x_ref, w_ref, b_ref, o_ref):
    # Hot path: matmul on MXU (f32 accumulate), bias add on VPU, tanh on EUP.
    x = x_ref[...]                       # (TM, K)
    w = w_ref[...]                       # (K, N_pad)   resident across grid
    b = b_ref[...]                       # (1, N_pad)   broadcasts over rows
    y = jnp.dot(x, w, preferred_element_type=jnp.float32) + b
    o_ref[...] = jnp.tanh(y).astype(o_ref.dtype)


@functools.partial(jax.jit, static_argnames=("tile_m",))
def feature_transformer(x, weight_t, bias, *, tile_m=512):
    """tanh(x @ weight_t + bias).

    x:        (M, K)   activations
    weight_t: (K, N)   pre-transposed torch weight (torch stores (N, K))
    bias:     (N,)     torch bias
    returns   (M, N)
    """
    M, K = x.shape
    Kw, N = weight_t.shape
    assert K == Kw and bias.shape == (N,)

    # ---- layout plumbing (free): lane-dense output, 8-aligned row tiles ----
    N_pad = _round_up(N, 128)                    # unmasked vector stores
    TM = tile_m if M >= tile_m else _round_up(M, 8)
    M_pad = _round_up(M, TM)

    x_p = jnp.pad(x, ((0, M_pad - M), (0, 0)))
    w_p = jnp.pad(weight_t, ((0, 0), (0, N_pad - N)))
    b_p = jnp.pad(bias, (0, N_pad - N)).reshape(1, N_pad)

    grid_m = M_pad // TM

    cost = pl.CostEstimate(
        flops=2 * M_pad * K * N_pad,
        transcendentals=M_pad * N_pad,
        bytes_accessed=(x_p.size + w_p.size + b_p.size + M_pad * N_pad) * 4,
    )

    out_p = pl.pallas_call(
        feature_transformer_kernel,
        out_shape=jax.ShapeDtypeStruct((M_pad, N_pad), x.dtype),
        grid_spec=pltpu.PrefetchScalarGridSpec(
            num_scalar_prefetch=0,
            grid=(grid_m,),
            in_specs=[
                # x tiled over rows; weight and bias resident (same block every step).
                pl.BlockSpec((TM, K), lambda i: (i, 0)),
                pl.BlockSpec((K, N_pad), lambda i: (0, 0)),
                pl.BlockSpec((1, N_pad), lambda i: (0, 0)),
            ],
            out_specs=pl.BlockSpec((TM, N_pad), lambda i: (i, 0)),
        ),
        compiler_params=pltpu.CompilerParams(
            # Row tiles are independent -> shard across TCs on v7x.
            dimension_semantics=("parallel",),
        ),
        cost_estimate=cost,
    )(x_p, w_p, b_p)

    # Strip padding back to the logical output.
    return out_p[:M, :N]


if __name__ == "__main__":
    key = jax.random.PRNGKey(0)
    k_x, k_w, k_b = jax.random.split(key, 3)

    batch = 8
    input_dim = 32
    output_dim = 16

    # torch.nn.Linear parameter layout: weight (output_dim, input_dim), bias (output_dim,).
    w_torch_layout = jax.random.normal(k_w, (output_dim, input_dim), jnp.float32) * 0.1
    bias = jax.random.normal(k_b, (output_dim,), jnp.float32) * 0.1
    x = jax.random.normal(k_x, (batch, input_dim), jnp.float32)

    # Glue: transpose weight once to (input_dim, output_dim).
    weight_t = w_torch_layout.T

    out = feature_transformer(x, weight_t, bias)
    out = jax.block_until_ready(out)

    # Reference: same math as torch.tanh(Linear(x)).
    ref = jnp.tanh(x @ weight_t + bias.reshape(1, output_dim))
    assert out.shape == (batch, output_dim)
    assert jnp.allclose(out, ref, atol=1e-5, rtol=1e-5)

    # TODO(synk): for large-K/N deployments on v6e/v7x, cast x/weight_t to bfloat16
    # (keep preferred_element_type=f32) for ~2x MXU throughput and half the HBM traffic.

    print("KERNEL_OK")
</pallas_src>

<mosaic_0001>
module attributes {stable_mosaic.version = 11 : i64} {
  func.func @feature_transformer_kernel(%arg0: i32, %arg1: memref<8x32xf32, #tpu.memory_space<vmem>>, %arg2: memref<32x128xf32, #tpu.memory_space<vmem>>, %arg3: memref<1x128xf32, #tpu.memory_space<vmem>>, %arg4: memref<8x128xf32, #tpu.memory_space<vmem>>) attributes {dimension_semantics = [#tpu.dimension_semantics<parallel>], iteration_bounds = array<i64: 1>, scalar_prefetch = 0 : i64, scratch_operands = 0 : i64, tpu.core_type = #tpu.core_type<tc>, window_params = [{transform_indices = @transform_0, window_bounds = array<i64: 8, 32>}, {pipeline_mode = #tpu.pipeline_mode<synchronous>, transform_indices = @transform_1, window_bounds = array<i64: 32, 128>}, {pipeline_mode = #tpu.pipeline_mode<synchronous>, transform_indices = @transform_2, window_bounds = array<i64: 1, 128>}, {transform_indices = @transform_3, window_bounds = array<i64: 8, 128>}]} {
    %c0 = arith.constant 0 : index
    %c0_0 = arith.constant 0 : index
    %0 = vector.load %arg1[%c0, %c0_0] : memref<8x32xf32, #tpu.memory_space<vmem>>, vector<8x32xf32>
    %c0_1 = arith.constant 0 : index
    %c0_2 = arith.constant 0 : index
    %1 = vector.load %arg2[%c0_1, %c0_2] : memref<32x128xf32, #tpu.memory_space<vmem>>, vector<32x128xf32>
    %c0_3 = arith.constant 0 : index
    %c0_4 = arith.constant 0 : index
    %2 = vector.load %arg3[%c0_3, %c0_4] : memref<1x128xf32, #tpu.memory_space<vmem>>, vector<1x128xf32>
    %cst = arith.constant dense<0.000000e+00> : vector<8x128xf32>
    %3 = tpu.matmul %0, %1, %cst {dimension_numbers = #tpu.dot_dimension_numbers<[1], [0], [0], [1], [0, 0, 1, 1], [], []>} : vector<8x32xf32>, vector<32x128xf32>, vector<8x128xf32> -> vector<8x128xf32>
    %4 = vector.broadcast %2 : vector<1x128xf32> to vector<8x128xf32>
    %5 = arith.addf %3, %4 : vector<8x128xf32>
    %6 = math.tanh %5 : vector<8x128xf32>
    %c0_5 = arith.constant 0 : index
    %c0_6 = arith.constant 0 : index
    %7 = vector.load %arg4[%c0_5, %c0_6] : memref<8x128xf32, #tpu.memory_space<vmem>>, vector<8x128xf32>
    tpu.vector_store %arg4[%c0_5, %c0_6], %6 {strides = array<i32>} : memref<8x128xf32, #tpu.memory_space<vmem>>, vector<8x128xf32>,
    return
  }
  func.func @transform_0(%arg0: i32) -> (i32, i32) {
    %c0_i32 = arith.constant 0 : i32
    %c0_i32_0 = arith.constant 0 : i32
    return %arg0, %c0_i32 : i32, i32
  }
  func.func @transform_1(%arg0: i32) -> (i32, i32) {
    %c0_i32 = arith.constant 0 : i32
    %c0_i32_0 = arith.constant 0 : i32
    %c0_i32_1 = arith.constant 0 : i32
    return %c0_i32, %c0_i32_0 : i32, i32
  }
  func.func @transform_2(%arg0: i32) -> (i32, i32) {
    %c0_i32 = arith.constant 0 : i32
    %c0_i32_0 = arith.constant 0 : i32
    %c0_i32_1 = arith.constant 0 : i32
    return %c0_i32, %c0_i32_0 : i32, i32
  }
  func.func @transform_3(%arg0: i32) -> (i32, i32) {
    %c0_i32 = arith.constant 0 : i32
    %c0_i32_0 = arith.constant 0 : i32
    return %arg0, %c0_i32 : i32, i32
  }
}

</mosaic_0001>

<bundles_post_ra>
// kernel: feature_transformer.1
= control target key start
LH: loop header
LB: loop body
LE: loop exit
PB: predicated region body
PF: predicated region fallthrough
CT: control target
= control target key end

     0   :  { %s139_s0 = inlined_call_operand.vmem [shape: f32[8,32], index: 0, kind: input, shape index: {}]   ;;  %s140_s1 = inlined_call_operand.vmem [shape: f32[32,128], index: 1, kind: input, shape index: {}]   ;;  %s141_s2 = inlined_call_operand.vmem [shape: f32[1,128], index: 2, kind: input, shape index: {}]   ;;  %s142_s3 = inlined_call_operand.hbm [shape: f32[8,128], index: 3, kind: output, shape index: {}]  }
   0x1   :  { %v19_v0 = vld [vmem:[%s140_s1 + $0x18] sm:$0xff]  ;;  %v18_v1 = vld [vmem:[%s140_s1 + $0x10] sm:$0xff]  ;;  %v17_v2 = vld [vmem:[%s140_s1 + $0x8] sm:$0xff] }
   0x2   :  { %40 = vmatpush.msra.mxu0 %v19_v0 }
   0x3   :  { %8 = vsyncpa [#allocation3], 0  ;;  %v16_v3 = vld [vmem:[%s140_s1] sm:$0xff]  ;;  %vm24_vm0 = vcmask 261120   ;;  %s97_s24 = smov [#allocation2]   ;;  %s57_s1 = sshll.u32 %s142_s3, 4  ;;  %s58_s1 = int_to_ptr.hbm [resolvable:$true] %s57_s1 }
   0x4   :  { %41 = vmatpush.msra.mxu0 %v18_v1  ;;  %v15_v4 = vld [vmem:[%s139_s0] sm:$0xff]  ;;  %s55_s25 = sshll.u32 %s97_s24, 4  ;;  %s56_s25 = int_to_ptr.vmem [resolvable:$true] %s55_s25 }
   0x5   :  { %v68_v5 = vld [vmem:[%s141_s2] ss:$0 sm:$0xff] }
   0x6   :  { %42 = vmatpush.msra.mxu0 %v17_v2 }
   0x8   :  { %43 = vmatpush.msra.mxu0 %v16_v3 }
   0x9   :  { %66 = vmatmul.msk.f32.vlgmr.msra.gmra.mxu0 %vm24_vm0, %v15_v4 }
  0x86   :  { %v45_v6 = vpop.f32.mrf.mxu0 }
  0x87   :  { %v46_v7 = vadd.f32 %v68_v5, %v45_v6 }
  0x89   :  { %69 = vtanh.f32 %v46_v7 }
  0x8f   :  { %v70_v8 = vpop.eup %69 }
  0x90   :  { %49 = vst [vmem:[#allocation2] sm:$0xff] %v70_v8 }
  0x91   :  { %60 = dma.vmem_to_hbm [thread:$0]  %s56_s25, 128, %s58_s1, [#allocation3]  }
  0x92   :  { %95 = dma.done.wait [#allocation3], 128  }
  0x93   :  { %96 = vsyncadd [#allocation3], 4294967168 }
  0x94   :  { %65 = vsyncpa [#allocation3], 1 }

</bundles_post_ra>
